<compile_context>
chip_gen: v7x
topology: tpu7x:2x2x1
jax: 0.10.0
libtpu: 0.0.40
codegen_flags: <defaults>
</compile_context>

<pallas_src>
import math
from functools import partial

import jax
import jax.numpy as jnp
from jax.experimental import pallas as pl
from jax.experimental.pallas import tpu as pltpu


def _round_up(x, m):
    return ((x + m - 1) // m) * m


def _lora_kernel(x_ref, a_ref, b_ref, o_ref, acc_ref, *, alpha):
    # x_ref: (TM, TK), a_ref: (TK, rank), b_ref: (rank, out_dim)
    # acc_ref: (TM, rank) f32 accumulator carried across the K grid axis.
    k = pl.program_id(1)

    @pl.when(k == 0)
    def _():
        acc_ref[...] = jnp.zeros_like(acc_ref)

    acc_ref[...] += jnp.dot(x_ref[...], a_ref[...],
                            preferred_element_type=jnp.float32)

    @pl.when(k == pl.num_programs(1) - 1)
    def _():
        # Scale the small (TM, rank) intermediate, then one rank-contraction
        # matmul against the VMEM-resident B, downcast once on store.
        xa = alpha * acc_ref[...]
        out = jnp.dot(xa, b_ref[...], preferred_element_type=jnp.float32)
        o_ref[...] = out.astype(o_ref.dtype)


def lora_forward(x, A, B, alpha, *, tm=512, tk=512, use_pallas=None):
    """x: (..., in_dim); A: (in_dim, rank); B: (rank, out_dim)."""
    orig_shape = x.shape
    in_dim, rank = A.shape
    out_dim = B.shape[1]

    x2d = x.reshape(-1, in_dim)
    M = x2d.shape[0]

    # Tiny-problem fallback: let XLA fuse it; Pallas pays off once bandwidth-bound.
    if use_pallas is None:
        use_pallas = (M * in_dim * x2d.dtype.itemsize) >= (256 * 1024)
    if not use_pallas:
        out2d = alpha * (x2d @ A @ B)
        return out2d.reshape(*orig_shape[:-1], out_dim)

    # --- Tile sizing -------------------------------------------------------
    # Row tile: multiple of 8 (sublane), capped at `tm`.
    if M <= tm:
        TM = _round_up(max(M, 1), 8)
    else:
        TM = tm
    M_pad = _round_up(M, TM)

    # K tile: full in_dim when it fits (full-extent block is always legal),
    # otherwise a lane-aligned 512 chunk with zero-padding on x and A.
    if in_dim <= tk:
        TK = in_dim
        in_pad = in_dim
    else:
        TK = tk  # multiple of (8, 128)
        in_pad = _round_up(in_dim, TK)

    # Zero-pad (rows of x contribute nothing; zero rows of A contribute nothing).
    x_p = x2d
    if M_pad != M or in_pad != in_dim:
        x_p = jnp.pad(x2d, ((0, M_pad - M), (0, in_pad - in_dim)))
    A_p = A
    if in_pad != in_dim:
        A_p = jnp.pad(A, ((0, in_pad - in_dim), (0, 0)))

    grid = (M_pad // TM, in_pad // TK)

    out2d = pl.pallas_call(
        partial(_lora_kernel, alpha=float(alpha)),
        out_shape=jax.ShapeDtypeStruct((M_pad, out_dim), x.dtype),
        grid_spec=pltpu.PrefetchScalarGridSpec(
            num_scalar_prefetch=0,
            grid=grid,
            in_specs=[
                # x: new (TM, TK) tile per (row, k) step -> pipelined DMA.
                pl.BlockSpec((TM, TK), lambda i, k: (i, k)),
                # A: only varies with k; rank is full-extent.
                pl.BlockSpec((TK, rank), lambda i, k: (k, 0)),
                # B: single block, VMEM-resident for the whole grid.
                pl.BlockSpec((rank, out_dim), lambda i, k: (0, 0)),
            ],
            # Output block fixed across k (written only at the last k step).
            out_specs=pl.BlockSpec((TM, out_dim), lambda i, k: (i, 0)),
            scratch_shapes=[pltpu.VMEM((TM, rank), jnp.float32)],
        ),
        compiler_params=pltpu.CompilerParams(
            # Row tiles are independent -> megacore sharding on v7x;
            # K axis carries the accumulator -> arbitrary.
            dimension_semantics=("parallel", "arbitrary")),
    )(x_p, A_p, B)

    out2d = out2d[:M]
    return out2d.reshape(*orig_shape[:-1], out_dim)


if __name__ == "__main__":
    # Shapes implied by the module: x (..., in_dim), A (in_dim, rank), B (rank, out_dim)
    batch, seq, in_dim, out_dim, rank, alpha = 2, 8, 32, 32, 4, 16.0

    key = jax.random.PRNGKey(0)
    kx, ka, kb = jax.random.split(key, 3)

    x = jax.random.normal(kx, (batch, seq, in_dim), dtype=jnp.float32)

    # Deterministic init mirroring torch.nn.init.kaiming_uniform_(A, a=sqrt(5)):
    # bound = sqrt(6 / ((1 + a^2) * fan_in)), fan_in = A.size(1) = rank
    bound = math.sqrt(6.0 / ((1.0 + 5.0) * rank))
    A = jax.random.uniform(ka, (in_dim, rank), dtype=jnp.float32,
                           minval=-bound, maxval=bound)
    # The module inits B to zeros (output would be all-zero); use small random
    # values here so the second matmul is actually exercised / checkable.
    B = 0.02 * jax.random.normal(kb, (rank, out_dim), dtype=jnp.float32)

    # Force the Pallas path even at this toy size so the kernel is exercised.
    out = lora_forward(x, A, B, alpha, use_pallas=True)
    out = jax.block_until_ready(out)

    # Reference check against plain JAX
    ref = alpha * (x @ A @ B)
    assert out.shape == (batch, seq, out_dim)
    assert jnp.allclose(out, ref, atol=1e-4, rtol=1e-4)

    # Also exercise the auto-fallback path (tiny problem -> plain jnp).
    out_fb = jax.block_until_ready(lora_forward(x, A, B, alpha))
    assert jnp.allclose(out_fb, ref, atol=1e-4, rtol=1e-4)

    print("KERNEL_OK")
</pallas_src>

<mosaic_0001>
module attributes {stable_mosaic.version = 11 : i64} {
  func.func @_lora_kernel(%arg0: i32, %arg1: i32, %arg2: memref<16x32xf32, #tpu.memory_space<vmem>>, %arg3: memref<32x4xf32, #tpu.memory_space<vmem>>, %arg4: memref<4x32xf32, #tpu.memory_space<vmem>>, %arg5: memref<16x32xf32, #tpu.memory_space<vmem>>, %arg6: memref<16x4xf32, #tpu.memory_space<vmem>>) attributes {dimension_semantics = [#tpu.dimension_semantics<parallel>, #tpu.dimension_semantics<arbitrary>], iteration_bounds = array<i64: 1, 1>, scalar_prefetch = 0 : i64, scratch_operands = 1 : i64, tpu.core_type = #tpu.core_type<tc>, window_params = [{transform_indices = @transform_0, window_bounds = array<i64: 16, 32>}, {transform_indices = @transform_1, window_bounds = array<i64: 32, 4>}, {pipeline_mode = #tpu.pipeline_mode<synchronous>, transform_indices = @transform_2, window_bounds = array<i64: 4, 32>}, {transform_indices = @transform_3, window_bounds = array<i64: 16, 32>}]} {
    %c0_i32 = arith.constant 0 : i32
    %0 = arith.cmpi eq, %arg1, %c0_i32 : i32
    %1 = arith.extui %0 : i1 to i32
    %c0_i32_0 = arith.constant 0 : i32
    %2 = arith.cmpi ne, %1, %c0_i32_0 : i32
    scf.if %2 {
      %cst_10 = arith.constant 0.000000e+00 : f32
      %12 = vector.broadcast %cst_10 : f32 to vector<16x4xf32>
      %c0_11 = arith.constant 0 : index
      %c0_12 = arith.constant 0 : index
      %13 = vector.load %arg6[%c0_11, %c0_12] : memref<16x4xf32, #tpu.memory_space<vmem>>, vector<16x4xf32>
      tpu.vector_store %arg6[%c0_11, %c0_12], %12 {strides = array<i32>} : memref<16x4xf32, #tpu.memory_space<vmem>>, vector<16x4xf32>,
    } else {
    }
    %c0 = arith.constant 0 : index
    %c0_1 = arith.constant 0 : index
    %3 = vector.load %arg6[%c0, %c0_1] : memref<16x4xf32, #tpu.memory_space<vmem>>, vector<16x4xf32>
    %c0_2 = arith.constant 0 : index
    %c0_3 = arith.constant 0 : index
    %4 = vector.load %arg2[%c0_2, %c0_3] : memref<16x32xf32, #tpu.memory_space<vmem>>, vector<16x32xf32>
    %c0_4 = arith.constant 0 : index
    %c0_5 = arith.constant 0 : index
    %5 = vector.load %arg3[%c0_4, %c0_5] : memref<32x4xf32, #tpu.memory_space<vmem>>, vector<32x4xf32>
    %cst = arith.constant dense<0.000000e+00> : vector<16x4xf32>
    %6 = tpu.matmul %4, %5, %cst {dimension_numbers = #tpu.dot_dimension_numbers<[1], [0], [0], [1], [0, 0, 1, 1], [], []>} : vector<16x32xf32>, vector<32x4xf32>, vector<16x4xf32> -> vector<16x4xf32>
    %7 = arith.addf %3, %6 : vector<16x4xf32>
    %c0_6 = arith.constant 0 : index
    %c0_7 = arith.constant 0 : index
    %8 = vector.load %arg6[%c0_6, %c0_7] : memref<16x4xf32, #tpu.memory_space<vmem>>, vector<16x4xf32>
    tpu.vector_store %arg6[%c0_6, %c0_7], %7 {strides = array<i32>} : memref<16x4xf32, #tpu.memory_space<vmem>>, vector<16x4xf32>,
    %c0_i32_8 = arith.constant 0 : i32
    %9 = arith.cmpi eq, %arg1, %c0_i32_8 : i32
    %10 = arith.extui %9 : i1 to i32
    %c0_i32_9 = arith.constant 0 : i32
    %11 = arith.cmpi ne, %10, %c0_i32_9 : i32
    scf.if %11 {
      %c0_10 = arith.constant 0 : index
      %c0_11 = arith.constant 0 : index
      %12 = vector.load %arg6[%c0_10, %c0_11] : memref<16x4xf32, #tpu.memory_space<vmem>>, vector<16x4xf32>
      %cst_12 = arith.constant 1.600000e+01 : f32
      %13 = vector.broadcast %cst_12 : f32 to vector<16x4xf32>
      %14 = arith.mulf %13, %12 : vector<16x4xf32>
      %c0_13 = arith.constant 0 : index
      %c0_14 = arith.constant 0 : index
      %15 = vector.load %arg4[%c0_13, %c0_14] : memref<4x32xf32, #tpu.memory_space<vmem>>, vector<4x32xf32>
      %cst_15 = arith.constant dense<0.000000e+00> : vector<16x32xf32>
      %16 = tpu.matmul %14, %15, %cst_15 {dimension_numbers = #tpu.dot_dimension_numbers<[1], [0], [0], [1], [0, 0, 1, 1], [], []>} : vector<16x4xf32>, vector<4x32xf32>, vector<16x32xf32> -> vector<16x32xf32>
      %c0_16 = arith.constant 0 : index
      %c0_17 = arith.constant 0 : index
      %17 = vector.load %arg5[%c0_16, %c0_17] : memref<16x32xf32, #tpu.memory_space<vmem>>, vector<16x32xf32>
      tpu.vector_store %arg5[%c0_16, %c0_17], %16 {strides = array<i32>} : memref<16x32xf32, #tpu.memory_space<vmem>>, vector<16x32xf32>,
    } else {
    }
    return
  }
  func.func @transform_0(%arg0: i32, %arg1: i32) -> (i32, i32) {
    %c0_i32 = arith.constant 0 : i32
    return %arg0, %arg1 : i32, i32
  }
  func.func @transform_1(%arg0: i32, %arg1: i32) -> (i32, i32) {
    %c0_i32 = arith.constant 0 : i32
    %c0_i32_0 = arith.constant 0 : i32
    return %arg1, %c0_i32 : i32, i32
  }
  func.func @transform_2(%arg0: i32, %arg1: i32) -> (i32, i32) {
    %c0_i32 = arith.constant 0 : i32
    %c0_i32_0 = arith.constant 0 : i32
    %c0_i32_1 = arith.constant 0 : i32
    return %c0_i32, %c0_i32_0 : i32, i32
  }
  func.func @transform_3(%arg0: i32, %arg1: i32) -> (i32, i32) {
    %c0_i32 = arith.constant 0 : i32
    %c0_i32_0 = arith.constant 0 : i32
    return %arg0, %c0_i32 : i32, i32
  }
}

</mosaic_0001>

<bundles_post_ra>
// kernel: tpu_custom_call.1
= control target key start
LH: loop header
LB: loop body
LE: loop exit
PB: predicated region body
PF: predicated region fallthrough
CT: control target
= control target key end

     0   :  { %vm30_vm0 = vcmask 261120   ;;  %vm19_vm1 = vcmask 31744   ;;  %v294_v6 = vmov 0.0   ;;  %s361_s0 = inlined_call_operand.vmem [shape: f32[16,32], index: 0, kind: input, shape index: {}]   ;;  %s362_s1 = inlined_call_operand.vmem [shape: f32[32,4], index: 1, kind: input, shape index: {}]   ;;  %s363_s2 = inlined_call_operand.vmem [shape: f32[4,32], index: 2, kind: input, shape index: {}]   ;;  %s364_s3 = inlined_call_operand.hbm [shape: f32[16,32], index: 3, kind: output, shape index: {}]  }
   0x1   :  { %v26_v0 = vld [vmem:[%s362_s1] sm:$0xff]  ;;  %v27_v1 = vld [vmem:[%s362_s1 + $0x8] sm:$0xff]  ;;  %v28_v2 = vld [vmem:[%s362_s1 + $0x10] sm:$0xff]  ;;  %21 = vst.msk [vmem:[#allocation2 + $0x8] sm:$0xff] %vm19_vm1, %v294_v6 }
   0x2   :  { %v258_v3 = vpack.c.bf16 %v27_v1, %v26_v0  ;;  %v29_v4 = vld [vmem:[%s362_s1 + $0x18] sm:$0xff]  ;;  %v24_v5 = vld [vmem:[%s361_s0] sm:$0xff]  ;;  %20 = vst.msk [vmem:[#allocation2] sm:$0xff] %vm19_vm1, %v294_v6 }
   0x3   :  { %v262_v7 = vpack.c.bf16 %v29_v4, %v28_v2  ;;  %250 = vmatprep.mubr.msk.f32.mxu0 %vm30_vm0, %v24_v5 }
   0x4   :  { %8 = vsyncpa [#allocation4], 0  ;;  %259 = vmatprep.subr.bf16.mxu0 %v258_v3  ;;  %v25_v8 = vld [vmem:[%s361_s0 + $0x8] sm:$0xff]  ;;  %v124_v9 = vld [vmem:[%s363_s2] sm:$0xf]  ;;  %vm131_vm2 = vcmask 1043456  }
   0x5   :  { %261 = vmatpush3.bf16.msra.mxu0 %v258_v3  ;;  %253 = vmatprep.subr.msk.mxu1 %vm131_vm2, %v124_v9  ;;  %s295_s0 = smov [#allocation3]  }
   0x6   :  { %263 = vmatprep.subr.bf16.mxu0 %v262_v7  ;;  %254 = vmatpush3.msk.msra.mxu1 %vm131_vm2, %v124_v9  ;;  %s217_s2 = sshll.u32 %s295_s0, 4  ;;  %s218_s2 = int_to_ptr.vmem [resolvable:$true] %s217_s2 }
   0x7   :  { %s270_s25 = scalar_lea.vmem %s218_s2, 256  ;;  %p275_p1 = scmp.lt.s32.totalorder %s218_s2, %s218_s2 }
   0x8   :  { %v23_v10 = vld [vmem:[#allocation2 + $0x8] sm:$0xff]  ;;  %p271_p0 = scmp.ne.s32.totalorder %s218_s2, %s270_s25  ;;  %p276_p2 = scmp.lt.s32.totalorder %s270_s25, %s270_s25 }
   0x9   :  { %265 = vmatpush3.bf16.msra.mxu0 %v262_v7  ;;  %v22_v11 = vld [vmem:[#allocation2] sm:$0xff] }
   0xa   :  { %p277_p3 = por %p276_p2, %p275_p1 }
   0xc   :  { %251 = vmatmul.mubr.msk.f32.vlgmr.msra.gmra.mrb[0].mxu0 %vm30_vm0, %v25_v8  ;;  %p278_p4 = pnand %p277_p3, %p271_p0 }
  0xdf   :  { %v252_v12 = vpop.f32.mrb[0].mxu0 }
  0xe0   :  { %v113_v13 = vadd.f32 %v252_v12, %v23_v10  ;;  %v103_v14 = vpop.f32.mrb[1].mxu0 }
  0xe1   :  { %v112_v15 = vadd.f32 %v103_v14, %v22_v11 }
  0xe2   :  { %116 = vst.msk [vmem:[#allocation2 + $0x8] sm:$0xff] %vm19_vm1, %v113_v13 }
  0xe3   :  { %115 = vst.msk [vmem:[#allocation2] sm:$0xff] %vm19_vm1, %v112_v15 }
  0xe9   :  { %v121_v16 = vld [vmem:[#allocation2 + $0x8] sm:$0xff] }
  0xea   :  { %v120_v17 = vld [vmem:[#allocation2] sm:$0xff]  ;;  %v123_v19 = vmul.f32 16.0, %v121_v16 }
  0xeb   :  { %v122_v18 = vmul.f32 16.0, %v120_v17 }
  0xed   :  { %255 = vmatprep.mubr.msk.f32.mxu1 %vm19_vm1, %v122_v18 }
  0xee   :  { %256 = vmatmul.mubr.msk.f32.vlgmr.msra.gmra.mrb[0].mxu1 %vm19_vm1, %v123_v19 }
 0x1c1   :  { %v257_v20 = vpop.f32.mrb[0].mxu1 }
 0x1c2   :  { %211 = vst.msk [vmem:[#allocation3 + $0x8] sm:$0xff] %vm30_vm0, %v257_v20  ;;  %v201_v21 = vpop.f32.mrb[1].mxu1 }
 0x1c3   :  { %210 = vst.msk [vmem:[#allocation3] sm:$0xff] %vm30_vm0, %v201_v21 }
 0x1c4   :  { %281 = shalt.err (!%p278_p4)
}
 0x1c5   :  { %s282_s28 = scalar_lea.hbm %s364_s3, 256 }
 0x1c6   :  { %p283_p5 = scmp.ne.s32.totalorder %s364_s3, %s282_s28  ;;  %p286_p6 = scmp.lt.u32.totalorder %s282_s28, %s364_s3 }
 0x1c8   :  { %p288_p7 = pnand %p286_p6, %p283_p5 }
 0x1ca   :  { %291 = shalt.err (!%p288_p7)
}
 0x1cb   :  { %s296_s6 = smov 128   ;;  %s297_s7 = smov 8  }
 0x1cc   :  { %223 = dma.vmem_to_hbm [thread:$0]  %s218_s2, 256, %s364_s3, [#allocation4], %s296_s6, %s296_s6, %s297_s7  }
 0x1cd   :  { %292 = dma.done.wait [#allocation4], 256  }
 0x1ce   :  { %293 = vsyncadd [#allocation4], 4294967040 }
 0x1cf   :  { %227 = vsyncpa [#allocation4], 1 }

</bundles_post_ra>
